<compile_context>
chip_gen: v7x
topology: tpu7x:2x2x1
jax: 0.10.0
libtpu: 0.0.40
codegen_flags: <defaults>
</compile_context>

<pallas_src>
import functools

import jax
import jax.numpy as jnp
import numpy as np
from jax import lax
from jax.experimental import pallas as pl
from jax.experimental.pallas import tpu as pltpu


# ----------------------------- fused kernel ------------------------------------------

def _fused_kan_kernel(x_ref, w1_ref, b1_ref, w2_ref, b2_ref, fc_ref, fcb_ref,
                      o_ref, xpad_ref, hpad_ref, *, H, W):
    """One batch element.

    x_ref  : (1, H, W*Cin)          lane-dense input
    w1_ref : (3, W*Cin,  W*Cmid)    banded stage-1 weights (one per vertical tap)
    b1_ref : (1, W*Cmid)            stage-1 folded bias, tiled across W
    w2_ref : (3, W*Cmid, W*Cmid)    banded stage-2 weights
    b2_ref : (1, W*Cmid)
    fc_ref : (W*Cmid, W*Cout)       block-diagonal 1x1 "fc" weight
    fcb_ref: (1, W*Cout)
    o_ref  : (1, H, W*Cout)         lane-dense output
    xpad_ref: VMEM (H+2, W*Cin)     vertically zero-padded input scratch
    hpad_ref: VMEM (H+2, W*Cmid)    vertically zero-padded stage-1 output scratch
    (horizontal zero-padding is folded into the banded weight matrices)
    """
    f32 = jnp.float32

    # ---- stage 1: folded depthwise+pointwise 3x3 conv + ReLU -------------------------
    zx = jnp.zeros((1, xpad_ref.shape[1]), xpad_ref.dtype)
    xpad_ref[0:1, :] = zx                      # top pad row
    xpad_ref[H + 1:H + 2, :] = zx              # bottom pad row
    xpad_ref[1:H + 1, :] = x_ref[0]            # interior (lane-aligned store)

    acc = b1_ref[...].astype(f32)              # init accumulator with the bias
    for ki in range(3):                        # 3 banded MXU matmuls (vertical taps)
        acc = acc + jnp.dot(xpad_ref[ki:ki + H, :], w1_ref[ki],
                            preferred_element_type=f32)
    h1 = jnp.maximum(acc, 0.0)                 # (H, W*Cmid)

    # ---- stage 2: folded depthwise+pointwise 3x3 conv + ReLU, then fused fc ----------
    zh = jnp.zeros((1, hpad_ref.shape[1]), hpad_ref.dtype)
    hpad_ref[0:1, :] = zh
    hpad_ref[H + 1:H + 2, :] = zh
    hpad_ref[1:H + 1, :] = h1

    acc = b2_ref[...].astype(f32)
    for ki in range(3):
        acc = acc + jnp.dot(hpad_ref[ki:ki + H, :], w2_ref[ki],
                            preferred_element_type=f32)
    h2 = jnp.maximum(acc, 0.0)                 # (H, W*Cmid)

    y = jnp.dot(h2, fc_ref[...], preferred_element_type=f32) + fcb_ref[...]
    o_ref[0] = y.astype(o_ref.dtype)           # (H, W*Cout): full-lane, unmasked stores


# ----------------------------- weight lowering (wrapper-side, layout plumbing) --------

def _band_matrices(w9, W):
    """w9: (3, 3, Ci, Co) folded conv weights -> (3, W*Ci, W*Co) banded matrices.

    band[ki][w_in*Ci + ci, j*Co + co] = w9[ki, w_in - j + 1, ci, co] inside the band,
    0 outside — i.e. the horizontal part of the SAME-padded 3x3 conv as a matmul.
    """
    _, _, Ci, Co = w9.shape
    w_in = jnp.arange(W)[:, None]
    j = jnp.arange(W)[None, :]
    kj = w_in - j + 1                                      # (W, W)
    valid = (kj >= 0) & (kj <= 2)
    kj_c = jnp.clip(kj, 0, 2)
    m = jnp.where(valid[None, :, :, None, None], w9[:, kj_c], 0.0)   # (3, W, W, Ci, Co)
    m = jnp.transpose(m, (0, 1, 3, 2, 4)).reshape(3, W * Ci, W * Co)
    return m


def _block_diag(w, W):
    """w: (Ci, Co) -> (W*Ci, W*Co) block-diagonal matrix (1x1 conv on (H, W*Ci) slabs)."""
    Ci, Co = w.shape
    eye = jnp.eye(W, dtype=w.dtype)
    return (eye[:, None, :, None] * w[None, :, None, :]).reshape(W * Ci, W * Co)


# ----------------------------- forward ------------------------------------------------

def kan_forward(x_nchw, params):
    """Forward pass of KANWithDepthwiseConv. x_nchw: (B, Cin, H, W) float32."""
    x = jnp.transpose(x_nchw, (0, 2, 3, 1)).astype(jnp.float32)      # NCHW -> NHWC
    B, H, W, Cin = x.shape
    Cmid = params["pw1_w"].shape[1]
    Cout = params["fc_w"].shape[1]

    # Fold depthwise+pointwise:  w9[ki,kj,ci,co] = dw[ki,kj,ci] * pw[ci,co]
    w9_1 = params["dw1_w"].reshape(3, 3, Cin)[..., None] * params["pw1_w"][None, None]
    b1 = params["dw1_b"] @ params["pw1_w"] + params["pw1_b"]          # (1, Cmid)
    w9_2 = params["dw2_w"].reshape(3, 3, Cmid)[..., None] * params["pw2_w"][None, None]
    b2 = params["dw2_b"] @ params["pw2_w"] + params["pw2_b"]          # (1, Cmid)

    # Lower to banded / block-diagonal matmul weights and lane-tiled biases.
    w1b = _band_matrices(w9_1, W)                                     # (3, W*Cin,  W*Cmid)
    w2b = _band_matrices(w9_2, W)                                     # (3, W*Cmid, W*Cmid)
    fc_bd = _block_diag(params["fc_w"], W)                            # (W*Cmid, W*Cout)
    b1t = jnp.tile(b1, (1, W))                                        # (1, W*Cmid)
    b2t = jnp.tile(b2, (1, W))
    fcbt = jnp.tile(params["fc_b"], (1, W))                           # (1, W*Cout)

    x_lane = x.reshape(B, H, W * Cin)                                 # free reshape

    out = pl.pallas_call(
        functools.partial(_fused_kan_kernel, H=H, W=W),
        out_shape=jax.ShapeDtypeStruct((B, H, W * Cout), jnp.float32),
        grid=(B,),
        in_specs=[
            pl.BlockSpec((1, H, W * Cin), lambda b: (b, 0, 0)),
            pl.BlockSpec((3, W * Cin, W * Cmid), lambda b: (0, 0, 0)),
            pl.BlockSpec((1, W * Cmid), lambda b: (0, 0)),
            pl.BlockSpec((3, W * Cmid, W * Cmid), lambda b: (0, 0, 0)),
            pl.BlockSpec((1, W * Cmid), lambda b: (0, 0)),
            pl.BlockSpec((W * Cmid, W * Cout), lambda b: (0, 0)),
            pl.BlockSpec((1, W * Cout), lambda b: (0, 0)),
        ],
        out_specs=pl.BlockSpec((1, H, W * Cout), lambda b: (b, 0, 0)),
        scratch_shapes=[pltpu.VMEM((H + 2, W * Cin), jnp.float32),
                        pltpu.VMEM((H + 2, W * Cmid), jnp.float32)],
        compiler_params=pltpu.CompilerParams(dimension_semantics=("parallel",)),
    )(x_lane, w1b, b1t, w2b, b2t, fc_bd, fcbt)

    out = out.reshape(B, H, W, Cout)                                  # free unflatten
    # PyTorch's .view(batch, -1, H, W) is a shape no-op; convert back to NCHW.
    return jnp.transpose(out, (0, 3, 1, 2))


# ------------------------- parameter init (synthetic, deterministic) ------------------

def init_params(key, in_channels, out_channels, num_stems):
    Cin, Cmid = in_channels, out_channels
    Cout = num_stems * in_channels
    ks = jax.random.split(key, 10)
    nrm = lambda k, shape: 0.1 * jax.random.normal(k, shape, jnp.float32)
    return dict(
        # depthwise weights stored as (9, C): entry [ki*3+kj, c] == torch weight[c, 0, ki, kj]
        dw1_w=nrm(ks[0], (9, Cin)),    dw1_b=nrm(ks[1], (1, Cin)),
        pw1_w=nrm(ks[2], (Cin, Cmid)), pw1_b=nrm(ks[3], (1, Cmid)),
        dw2_w=nrm(ks[4], (9, Cmid)),   dw2_b=nrm(ks[5], (1, Cmid)),
        pw2_w=nrm(ks[6], (Cmid, Cmid)), pw2_b=nrm(ks[7], (1, Cmid)),
        fc_w=nrm(ks[8], (Cmid, Cout)), fc_b=nrm(ks[9], (1, Cout)),
    )


# ------------------------- pure-JAX reference (for correctness check) ------------------

def reference_forward(x_nchw, p):
    def dw_conv(x, w_flat, b):
        C = x.shape[1]
        w = jnp.transpose(w_flat.reshape(3, 3, C), (2, 0, 1))[:, None, :, :]   # OIHW
        y = lax.conv_general_dilated(x, w, (1, 1), ((1, 1), (1, 1)),
                                     dimension_numbers=("NCHW", "OIHW", "NCHW"),
                                     feature_group_count=C)
        return y + b.reshape(1, C, 1, 1)

    def pw_conv(x, w, b):
        wo = jnp.transpose(w, (1, 0))[:, :, None, None]                        # OIHW
        y = lax.conv_general_dilated(x, wo, (1, 1), ((0, 0), (0, 0)),
                                     dimension_numbers=("NCHW", "OIHW", "NCHW"))
        return y + b.reshape(1, -1, 1, 1)

    h = pw_conv(dw_conv(x_nchw, p["dw1_w"], p["dw1_b"]), p["pw1_w"], p["pw1_b"])
    h = jnp.maximum(h, 0.0)
    h = pw_conv(dw_conv(h, p["dw2_w"], p["dw2_b"]), p["pw2_w"], p["pw2_b"])
    h = jnp.maximum(h, 0.0)
    return pw_conv(h, p["fc_w"], p["fc_b"])


if __name__ == "__main__":
    B = 2
    in_channels, out_channels = 2, 8
    n_mels, target_length = 16, 16
    num_stems = 4

    key = jax.random.PRNGKey(0)
    kx, kp = jax.random.split(key)
    x = jax.random.normal(kx, (B, in_channels, n_mels, target_length), jnp.float32)
    params = init_params(kp, in_channels, out_channels, num_stems)

    out = jax.jit(kan_forward)(x, params)
    out = jax.block_until_ready(out)

    assert out.shape == (B, num_stems * in_channels, n_mels, target_length), out.shape

    ref = reference_forward(x, params)
    np.testing.assert_allclose(np.asarray(out), np.asarray(ref), rtol=1e-4, atol=1e-4)

    print("KERNEL_OK")
</pallas_src>

<mosaic_0001>
module attributes {stable_mosaic.version = 11 : i64} {
  func.func @_fused_kan_kernel(%arg0: i32, %arg1: memref<1x16x32xf32, #tpu.memory_space<vmem>>, %arg2: memref<3x32x128xf32, #tpu.memory_space<vmem>>, %arg3: memref<1x128xf32, #tpu.memory_space<vmem>>, %arg4: memref<3x128x128xf32, #tpu.memory_space<vmem>>, %arg5: memref<1x128xf32, #tpu.memory_space<vmem>>, %arg6: memref<128x128xf32, #tpu.memory_space<vmem>>, %arg7: memref<1x128xf32, #tpu.memory_space<vmem>>, %arg8: memref<1x16x128xf32, #tpu.memory_space<vmem>>, %arg9: memref<18x32xf32, #tpu.memory_space<vmem>>, %arg10: memref<18x128xf32, #tpu.memory_space<vmem>>) attributes {dimension_semantics = [#tpu.dimension_semantics<parallel>], iteration_bounds = array<i64: 2>, scalar_prefetch = 0 : i64, scratch_operands = 2 : i64, tpu.core_type = #tpu.core_type<tc>, window_params = [{transform_indices = @transform_0, window_bounds = array<i64: 1, 16, 32>}, {pipeline_mode = #tpu.pipeline_mode<synchronous>, transform_indices = @transform_1, window_bounds = array<i64: 3, 32, 128>}, {pipeline_mode = #tpu.pipeline_mode<synchronous>, transform_indices = @transform_2, window_bounds = array<i64: 1, 128>}, {pipeline_mode = #tpu.pipeline_mode<synchronous>, transform_indices = @transform_3, window_bounds = array<i64: 3, 128, 128>}, {pipeline_mode = #tpu.pipeline_mode<synchronous>, transform_indices = @transform_4, window_bounds = array<i64: 1, 128>}, {pipeline_mode = #tpu.pipeline_mode<synchronous>, transform_indices = @transform_5, window_bounds = array<i64: 128, 128>}, {pipeline_mode = #tpu.pipeline_mode<synchronous>, transform_indices = @transform_6, window_bounds = array<i64: 1, 128>}, {transform_indices = @transform_7, window_bounds = array<i64: 1, 16, 128>}]} {
    %cst = arith.constant 0.000000e+00 : f32
    %0 = vector.broadcast %cst : f32 to vector<1x32xf32>
    %c0 = arith.constant 0 : index
    %c0_0 = arith.constant 0 : index
    %1 = vector.load %arg9[%c0, %c0_0] : memref<18x32xf32, #tpu.memory_space<vmem>>, vector<1x32xf32>
    tpu.vector_store %arg9[%c0, %c0_0], %0 {strides = array<i32>} : memref<18x32xf32, #tpu.memory_space<vmem>>, vector<1x32xf32>,
    %c17 = arith.constant 17 : index
    %c0_1 = arith.constant 0 : index
    %2 = vector.load %arg9[%c17, %c0_1] : memref<18x32xf32, #tpu.memory_space<vmem>>, vector<1x32xf32>
    tpu.vector_store %arg9[%c17, %c0_1], %0 {strides = array<i32>} : memref<18x32xf32, #tpu.memory_space<vmem>>, vector<1x32xf32>,
    %c0_2 = arith.constant 0 : index
    %c0_3 = arith.constant 0 : index
    %c0_4 = arith.constant 0 : index
    %3 = vector.load %arg1[%c0_2, %c0_3, %c0_4] : memref<1x16x32xf32, #tpu.memory_space<vmem>>, vector<1x16x32xf32>
    %4 = vector.shape_cast %3 : vector<1x16x32xf32> to vector<16x32xf32>
    %c1 = arith.constant 1 : index
    %c0_5 = arith.constant 0 : index
    %5 = vector.load %arg9[%c1, %c0_5] : memref<18x32xf32, #tpu.memory_space<vmem>>, vector<16x32xf32>
    tpu.vector_store %arg9[%c1, %c0_5], %4 {strides = array<i32>} : memref<18x32xf32, #tpu.memory_space<vmem>>, vector<16x32xf32>,
    %c0_6 = arith.constant 0 : index
    %c0_7 = arith.constant 0 : index
    %6 = vector.load %arg3[%c0_6, %c0_7] : memref<1x128xf32, #tpu.memory_space<vmem>>, vector<1x128xf32>
    %c0_8 = arith.constant 0 : index
    %c0_9 = arith.constant 0 : index
    %7 = vector.load %arg9[%c0_8, %c0_9] : memref<18x32xf32, #tpu.memory_space<vmem>>, vector<16x32xf32>
    %c0_10 = arith.constant 0 : index
    %c0_11 = arith.constant 0 : index
    %c0_12 = arith.constant 0 : index
    %8 = vector.load %arg2[%c0_10, %c0_11, %c0_12] : memref<3x32x128xf32, #tpu.memory_space<vmem>>, vector<1x32x128xf32>
    %9 = vector.shape_cast %8 : vector<1x32x128xf32> to vector<32x128xf32>
    %cst_13 = arith.constant dense<0.000000e+00> : vector<16x128xf32>
    %10 = tpu.matmul %7, %9, %cst_13 {dimension_numbers = #tpu.dot_dimension_numbers<[1], [0], [0], [1], [0, 0, 1, 1], [], []>} : vector<16x32xf32>, vector<32x128xf32>, vector<16x128xf32> -> vector<16x128xf32>
    %11 = vector.broadcast %6 : vector<1x128xf32> to vector<16x128xf32>
    %12 = arith.addf %11, %10 : vector<16x128xf32>
    %c1_14 = arith.constant 1 : index
    %c0_15 = arith.constant 0 : index
    %13 = vector.load %arg9[%c1_14, %c0_15] : memref<18x32xf32, #tpu.memory_space<vmem>>, vector<16x32xf32>
    %c1_16 = arith.constant 1 : index
    %c0_17 = arith.constant 0 : index
    %c0_18 = arith.constant 0 : index
    %14 = vector.load %arg2[%c1_16, %c0_17, %c0_18] : memref<3x32x128xf32, #tpu.memory_space<vmem>>, vector<1x32x128xf32>
    %15 = vector.shape_cast %14 : vector<1x32x128xf32> to vector<32x128xf32>
    %cst_19 = arith.constant dense<0.000000e+00> : vector<16x128xf32>
    %16 = tpu.matmul %13, %15, %cst_19 {dimension_numbers = #tpu.dot_dimension_numbers<[1], [0], [0], [1], [0, 0, 1, 1], [], []>} : vector<16x32xf32>, vector<32x128xf32>, vector<16x128xf32> -> vector<16x128xf32>
    %17 = arith.addf %12, %16 : vector<16x128xf32>
    %c2 = arith.constant 2 : index
    %c0_20 = arith.constant 0 : index
    %18 = vector.load %arg9[%c2, %c0_20] : memref<18x32xf32, #tpu.memory_space<vmem>>, vector<16x32xf32>
    %c2_21 = arith.constant 2 : index
    %c0_22 = arith.constant 0 : index
    %c0_23 = arith.constant 0 : index
    %19 = vector.load %arg2[%c2_21, %c0_22, %c0_23] : memref<3x32x128xf32, #tpu.memory_space<vmem>>, vector<1x32x128xf32>
    %20 = vector.shape_cast %19 : vector<1x32x128xf32> to vector<32x128xf32>
    %cst_24 = arith.constant dense<0.000000e+00> : vector<16x128xf32>
    %21 = tpu.matmul %18, %20, %cst_24 {dimension_numbers = #tpu.dot_dimension_numbers<[1], [0], [0], [1], [0, 0, 1, 1], [], []>} : vector<16x32xf32>, vector<32x128xf32>, vector<16x128xf32> -> vector<16x128xf32>
    %22 = arith.addf %17, %21 : vector<16x128xf32>
    %cst_25 = arith.constant 0.000000e+00 : f32
    %23 = vector.broadcast %cst_25 : f32 to vector<16x128xf32>
    %24 = arith.maximumf %22, %23 : vector<16x128xf32>
    %cst_26 = arith.constant 0.000000e+00 : f32
    %25 = vector.broadcast %cst_26 : f32 to vector<1x128xf32>
    %c0_27 = arith.constant 0 : index
    %c0_28 = arith.constant 0 : index
    %26 = vector.load %arg10[%c0_27, %c0_28] : memref<18x128xf32, #tpu.memory_space<vmem>>, vector<1x128xf32>
    tpu.vector_store %arg10[%c0_27, %c0_28], %25 {strides = array<i32>} : memref<18x128xf32, #tpu.memory_space<vmem>>, vector<1x128xf32>,
    %c17_29 = arith.constant 17 : index
    %c0_30 = arith.constant 0 : index
    %27 = vector.load %arg10[%c17_29, %c0_30] : memref<18x128xf32, #tpu.memory_space<vmem>>, vector<1x128xf32>
    tpu.vector_store %arg10[%c17_29, %c0_30], %25 {strides = array<i32>} : memref<18x128xf32, #tpu.memory_space<vmem>>, vector<1x128xf32>,
    %c1_31 = arith.constant 1 : index
    %c0_32 = arith.constant 0 : index
    %28 = vector.load %arg10[%c1_31, %c0_32] : memref<18x128xf32, #tpu.memory_space<vmem>>, vector<16x128xf32>
    tpu.vector_store %arg10[%c1_31, %c0_32], %24 {strides = array<i32>} : memref<18x128xf32, #tpu.memory_space<vmem>>, vector<16x128xf32>,
    %c0_33 = arith.constant 0 : index
    %c0_34 = arith.constant 0 : index
    %29 = vector.load %arg5[%c0_33, %c0_34] : memref<1x128xf32, #tpu.memory_space<vmem>>, vector<1x128xf32>
    %c0_35 = arith.constant 0 : index
    %c0_36 = arith.constant 0 : index
    %30 = vector.load %arg10[%c0_35, %c0_36] : memref<18x128xf32, #tpu.memory_space<vmem>>, vector<16x128xf32>
    %c0_37 = arith.constant 0 : index
    %c0_38 = arith.constant 0 : index
    %c0_39 = arith.constant 0 : index
    %31 = vector.load %arg4[%c0_37, %c0_38, %c0_39] : memref<3x128x128xf32, #tpu.memory_space<vmem>>, vector<1x128x128xf32>
    %32 = vector.shape_cast %31 : vector<1x128x128xf32> to vector<128x128xf32>
    %cst_40 = arith.constant dense<0.000000e+00> : vector<16x128xf32>
    %33 = tpu.matmul %30, %32, %cst_40 {dimension_numbers = #tpu.dot_dimension_numbers<[1], [0], [0], [1], [0, 0, 1, 1], [], []>} : vector<16x128xf32>, vector<128x128xf32>, vector<16x128xf32> -> vector<16x128xf32>
    %34 = vector.broadcast %29 : vector<1x128xf32> to vector<16x128xf32>
    %35 = arith.addf %34, %33 : vector<16x128xf32>
    %c1_41 = arith.constant 1 : index
    %c0_42 = arith.constant 0 : index
    %36 = vector.load %arg10[%c1_41, %c0_42] : memref<18x128xf32, #tpu.memory_space<vmem>>, vector<16x128xf32>
    %c1_43 = arith.constant 1 : index
    %c0_44 = arith.constant 0 : index
    %c0_45 = arith.constant 0 : index
    %37 = vector.load %arg4[%c1_43, %c0_44, %c0_45] : memref<3x128x128xf32, #tpu.memory_space<vmem>>, vector<1x128x128xf32>
    %38 = vector.shape_cast %37 : vector<1x128x128xf32> to vector<128x128xf32>
    %cst_46 = arith.constant dense<0.000000e+00> : vector<16x128xf32>
    %39 = tpu.matmul %36, %38, %cst_46 {dimension_numbers = #tpu.dot_dimension_numbers<[1], [0], [0], [1], [0, 0, 1, 1], [], []>} : vector<16x128xf32>, vector<128x128xf32>, vector<16x128xf32> -> vector<16x128xf32>
    %40 = arith.addf %35, %39 : vector<16x128xf32>
    %c2_47 = arith.constant 2 : index
    %c0_48 = arith.constant 0 : index
    %41 = vector.load %arg10[%c2_47, %c0_48] : memref<18x128xf32, #tpu.memory_space<vmem>>, vector<16x128xf32>
    %c2_49 = arith.constant 2 : index
    %c0_50 = arith.constant 0 : index
    %c0_51 = arith.constant 0 : index
    %42 = vector.load %arg4[%c2_49, %c0_50, %c0_51] : memref<3x128x128xf32, #tpu.memory_space<vmem>>, vector<1x128x128xf32>
    %43 = vector.shape_cast %42 : vector<1x128x128xf32> to vector<128x128xf32>
    %cst_52 = arith.constant dense<0.000000e+00> : vector<16x128xf32>
    %44 = tpu.matmul %41, %43, %cst_52 {dimension_numbers = #tpu.dot_dimension_numbers<[1], [0], [0], [1], [0, 0, 1, 1], [], []>} : vector<16x128xf32>, vector<128x128xf32>, vector<16x128xf32> -> vector<16x128xf32>
    %45 = arith.addf %40, %44 : vector<16x128xf32>
    %cst_53 = arith.constant 0.000000e+00 : f32
    %46 = vector.broadcast %cst_53 : f32 to vector<16x128xf32>
    %47 = arith.maximumf %45, %46 : vector<16x128xf32>
    %c0_54 = arith.constant 0 : index
    %c0_55 = arith.constant 0 : index
    %48 = vector.load %arg6[%c0_54, %c0_55] : memref<128x128xf32, #tpu.memory_space<vmem>>, vector<128x128xf32>
    %cst_56 = arith.constant dense<0.000000e+00> : vector<16x128xf32>
    %49 = tpu.matmul %47, %48, %cst_56 {dimension_numbers = #tpu.dot_dimension_numbers<[1], [0], [0], [1], [0, 0, 1, 1], [], []>} : vector<16x128xf32>, vector<128x128xf32>, vector<16x128xf32> -> vector<16x128xf32>
    %c0_57 = arith.constant 0 : index
    %c0_58 = arith.constant 0 : index
    %50 = vector.load %arg7[%c0_57, %c0_58] : memref<1x128xf32, #tpu.memory_space<vmem>>, vector<1x128xf32>
    %51 = vector.broadcast %50 : vector<1x128xf32> to vector<16x128xf32>
    %52 = arith.addf %49, %51 : vector<16x128xf32>
    %c0_59 = arith.constant 0 : index
    %c0_60 = arith.constant 0 : index
    %c0_61 = arith.constant 0 : index
    %53 = vector.load %arg8[%c0_59, %c0_60, %c0_61] : memref<1x16x128xf32, #tpu.memory_space<vmem>>, vector<1x16x128xf32>
    %54 = vector.shape_cast %53 : vector<1x16x128xf32> to vector<16x128xf32>
    %55 = vector.shape_cast %52 : vector<16x128xf32> to vector<1x16x128xf32>
    tpu.vector_store %arg8[%c0_59, %c0_60, %c0_61], %55 {strides = array<i32>} : memref<1x16x128xf32, #tpu.memory_space<vmem>>, vector<1x16x128xf32>,
    return
  }
  func.func @transform_0(%arg0: i32) -> (i32, i32, i32) {
    %c0_i32 = arith.constant 0 : i32
    %c0_i32_0 = arith.constant 0 : i32
    %c0_i32_1 = arith.constant 0 : i32
    return %arg0, %c0_i32, %c0_i32_0 : i32, i32, i32
  }
  func.func @transform_1(%arg0: i32) -> (i32, i32, i32) {
    %c0_i32 = arith.constant 0 : i32
    %c0_i32_0 = arith.constant 0 : i32
    %c0_i32_1 = arith.constant 0 : i32
    %c0_i32_2 = arith.constant 0 : i32
    return %c0_i32, %c0_i32_0, %c0_i32_1 : i32, i32, i32
  }
  func.func @transform_2(%arg0: i32) -> (i32, i32) {
    %c0_i32 = arith.constant 0 : i32
    %c0_i32_0 = arith.constant 0 : i32
    %c0_i32_1 = arith.constant 0 : i32
    return %c0_i32, %c0_i32_0 : i32, i32
  }
  func.func @transform_3(%arg0: i32) -> (i32, i32, i32) {
    %c0_i32 = arith.constant 0 : i32
    %c0_i32_0 = arith.constant 0 : i32
    %c0_i32_1 = arith.constant 0 : i32
    %c0_i32_2 = arith.constant 0 : i32
    return %c0_i32, %c0_i32_0, %c0_i32_1 : i32, i32, i32
  }
  func.func @transform_4(%arg0: i32) -> (i32, i32) {
    %c0_i32 = arith.constant 0 : i32
    %c0_i32_0 = arith.constant 0 : i32
    %c0_i32_1 = arith.constant 0 : i32
    return %c0_i32, %c0_i32_0 : i32, i32
  }
  func.func @transform_5(%arg0: i32) -> (i32, i32) {
    %c0_i32 = arith.constant 0 : i32
    %c0_i32_0 = arith.constant 0 : i32
    %c0_i32_1 = arith.constant 0 : i32
    return %c0_i32, %c0_i32_0 : i32, i32
  }
  func.func @transform_6(%arg0: i32) -> (i32, i32) {
    %c0_i32 = arith.constant 0 : i32
    %c0_i32_0 = arith.constant 0 : i32
    %c0_i32_1 = arith.constant 0 : i32
    return %c0_i32, %c0_i32_0 : i32, i32
  }
  func.func @transform_7(%arg0: i32) -> (i32, i32, i32) {
    %c0_i32 = arith.constant 0 : i32
    %c0_i32_0 = arith.constant 0 : i32
    %c0_i32_1 = arith.constant 0 : i32
    return %arg0, %c0_i32, %c0_i32_0 : i32, i32, i32
  }
}

</mosaic_0001>

<bundles_post_ra>
// kernel: mul.29
= control target key start
LH: loop header
LB: loop body
LE: loop exit
PB: predicated region body
PF: predicated region fallthrough
CT: control target
= control target key end

     0   :  { %vm3_vm0 = vcmask 64512   ;;  %s60_s0 = inlined_call_operand.vmem [shape: f32[9,8], index: 0, kind: input, shape index: {}]   ;;  %s61_s1 = inlined_call_operand.vmem [shape: f32[3,3,8], index: 1, kind: output, shape index: {}]  }
   0x1   :  { %v2_v0 = vld [vmem:[%s60_s0] sm:$0xff]   ;;  %v32_v1 = vld [vmem:[%s60_s0 + $0x8] sm:$0x1]  }
   0x2   :  { %4 = vst.msk [vmem:[#allocation0] sm:$0x7] %vm3_vm0, %v2_v0   ;;  %6 = vst.msk [vmem:[#allocation0 + $0x5] sm:$0x38] %vm3_vm0, %v2_v0  }
   0x3   :  { %8 = vst.msk [vmem:[#allocation0 + $0xa] sm:$0xc0] %vm3_vm0, %v2_v0   ;;  %13 = vst.msk [vmem:[#allocation0 + $0x12] sm:$0x1] %vm3_vm0, %v32_v1  }
   0x9   :  { %v17_v2 = vld [vmem:[#allocation0] sm:$0xf]  ;;  %v21_v3 = vld [vmem:[#allocation0 + $0x8] sm:$0xf] }
   0xa   :  { %v26_v4 = vld [vmem:[#allocation0 + $0x10] sm:$0xf]  ;;  %19 = vst [vmem:[%s61_s1] sm:$0xf] %v17_v2  ;;  %33 = vst [vmem:[%s61_s1 + $0x4] sm:$0xf] %v21_v3 }
   0xb   :  { %34 = vst [vmem:[%s61_s1 + $0x8] sm:$0xf] %v26_v4 }

// kernel: mul.22
= control target key start
LH: loop header
LB: loop body
LE: loop exit
PB: predicated region body
PF: predicated region fallthrough
CT: control target
= control target key end

     0   :  { %vm7_vm0 = vcmask 23552   ;;  %s36_s8 = smov 122   ;;  %s56_s0 = inlined_call_operand.vmem [shape: f32[9,2], index: 0, kind: input, shape index: {}]   ;;  %s57_s1 = inlined_call_operand.vmem [shape: f32[3,3,2], index: 1, kind: output, shape index: {}]  }
   0x1   :  { %v4_v0 = vld [vmem:[%s56_s0] sm:$0x3]  ;;  %s35_s0 = smov 125  }
   0x2   :  { %5 = vst [vmem:[#allocation1] sm:$0x3] %v4_v0 }
   0x9   :  { %v9_v1 = vld [vmem:[#allocation1] sm:$0x3]  }
   0xa   :  { %v6_v2 = vld [vmem:[#allocation1] sm:$0x3]   ;;  %10 = vrot.lane.b32.xlu0 %v9_v1, %s35_s0 }
   0xb   :  { %8 = vst.msk [vmem:[#allocation0] ss:$8 sm:$0x3] %vm7_vm0, %v6_v2   ;;  %v15_v3 = vld [vmem:[#allocation1] sm:$0x3]  }
   0xe   :  { %16 = vrot.lane.b32.xlu0 %v15_v3, %s36_s8 }
  0x7c   :  { %v11_v4 = vpop.permute.xlu0 %10  }
  0x7d   :  { %14 = vst.msk [vmem:[#allocation0 + $0x1] ss:$8 sm:$0x3] %vm7_vm0, %v11_v4  }
  0x80   :  { %v17_v5 = vpop.permute.xlu0 %16  }
  0x81   :  { %20 = vst.msk [vmem:[#allocation0 + $0x2] ss:$8 sm:$0x3] %vm7_vm0, %v17_v5  }
  0x88   :  { %v24_v6 = vld [vmem:[#allocation0] sm:$0xf]  ;;  %v28_v7 = vld [vmem:[#allocation0 + $0x8] sm:$0xf] }
  0x89   :  { %26 = vst [vmem:[%s57_s1] sm:$0xf] %v24_v6  ;;  %32 = vst [vmem:[%s57_s1 + $0x4] sm:$0xf] %v28_v7 }

// kernel: kan_forward.1
= control target key start
LH: loop header
LB: loop body
LE: loop exit
PB: predicated region body
PF: predicated region fallthrough
CT: control target
= control target key end

     0   :  { %s1567_s24 = smov 0   ;;  %s1836_s0 = inlined_call_operand.vmem [shape: f32[2,16,32], index: 0, kind: input, shape index: {}]   ;;  %s1837_s1 = inlined_call_operand.vmem [shape: f32[3,32,128], index: 1, kind: input, shape index: {}]   ;;  %s1838_s2 = inlined_call_operand.vmem [shape: f32[1,128], index: 2, kind: input, shape index: {}]   ;;  %s1839_s3 = inlined_call_operand.vmem [shape: f32[3,128,128], index: 3, kind: input, shape index: {}]   ;;  %s1840_s4 = inlined_call_operand.vmem [shape: f32[1,128], index: 4, kind: input, shape index: {}]   ;;  %s1841_s5 = inlined_call_operand.vmem [shape: f32[128,128], index: 5, kind: input, shape index: {}]   ;;  %s1842_s6 = inlined_call_operand.vmem [shape: f32[1,128], index: 6, kind: input, shape index: {}]   ;;  %s1843_s7 = inlined_call_operand.vmem [shape: f32[2,16,128], index: 7, kind: output, shape index: {}]  }
   0x1 LB: > { %s1020_s25 = sadd.s32 4294967295, %s1524_s24   ;;  %p1024_p0 = scmp.ge.s32.totalorder %s1524_s24, 1  ;;  %s1524_s24 = sphi %s1567_s24, %s17_s24  }
   0x2   : > { %p237_p1 = scmp.lt.s32.totalorder %s1524_s24, 3 }
   0x4   : > { %p238_p2 = pnand %p1024_p0, %p237_p1 }
   0x5   : > { %v1032_v0 = vld [vmem:[%s1837_s1 + $0x20] sm:$0xff] (!%p238_p2)  ;;  %v1033_v1 = vld [vmem:[%s1837_s1 + $0x28] sm:$0xff] (!%p238_p2)  ;;  %v1034_v2 = vld [vmem:[%s1837_s1 + $0x30] sm:$0xff] (!%p238_p2)  ;;  %p269_p3 = scmp.lt.s32.totalorder (!%p238_p2), %s1020_s25, 1  ;;  %vm279_vm0 = vcmask (!%p238_p2), 253952   ;;  %v1526_v12 = vmov (!%p238_p2), 0.0  }
   0x6   : > { %241 = sbr.rel (%p238_p2) target bundleno = 718 (0x2ce), region = 48  ;;  %v1353_v3 = vpack.c.bf16 (!%p238_p2), %v1033_v1, %v1032_v0  ;;  %v1035_v4 = vld [vmem:[%s1837_s1 + $0x38] sm:$0xff] (!%p238_p2)  ;;  %v290_v5 = vld [vmem:[%s1837_s1] sm:$0xff] (!%p238_p2)  ;;  %v291_v6 = vld [vmem:[%s1837_s1 + $0x8] sm:$0xff] (!%p238_p2)  ;;  %280 = vst.msk [vmem:[#allocation2] sm:$0x1] (!%p238_p2), %vm279_vm0, %v1526_v12 }
   0x7   : > { %v1357_v7 = vpack.c.bf16 (!%p238_p2), %v1035_v4, %v1034_v2  ;;  %v1345_v8 = vpack.c.bf16 (!%p238_p2), %v291_v6, %v290_v5  ;;  %v1038_v9 = vld [vmem:[%s1837_s1 + $0x40] sm:$0xff] (!%p238_p2)  ;;  %v1039_v10 = vld [vmem:[%s1837_s1 + $0x48] sm:$0xff] (!%p238_p2)  ;;  %v292_v11 = vld [vmem:[%s1837_s1 + $0x10] sm:$0xff] (!%p238_p2)  ;;  %281 = vst.msk [vmem:[#allocation2 + $0x11] sm:$0x1] (!%p238_p2), %vm279_vm0, %v1526_v12  ;;  %vm284_vm1 = vcmask (!%p238_p2), 261120  }
   0x8   : > { %565 = vst [vmem:[#allocation3] sm:$0x1] (!%p238_p2), %v1526_v12  ;;  %566 = vst [vmem:[#allocation3 + $0x11] sm:$0x1] (!%p238_p2), %v1526_v12  ;;  %1354 = vmatprep.subr.bf16.mxu0 (!%p238_p2), %v1353_v3  ;;  %v293_v13 = vld [vmem:[%s1837_s1 + $0x18] sm:$0xff] (!%p238_p2)  ;;  %v1045_v15 = vld [vmem:[%s1839_s3 + $0x80] sm:$0xff] (!%p238_p2)  ;;  %v1361_v17 = vpack.c.bf16 (!%p238_p2), %v1039_v10, %v1038_v9 }
   0x9   : > { %1356 = vmatpush3.bf16.msra.mxu0 (!%p238_p2), %v1353_v3  ;;  %1346 = vmatprep.subr.bf16.mxu1 (!%p238_p2), %v1345_v8  ;;  %v1349_v14 = vpack.c.bf16 (!%p238_p2), %v293_v13, %v292_v11  ;;  %v1046_v16 = vld [vmem:[%s1839_s3 + $0x88] sm:$0xff] (!%p238_p2)  ;;  %v1040_v21 = vld [vmem:[%s1837_s1 + $0x50] sm:$0xff] (!%p238_p2)  ;;  %v1041_v22 = vld [vmem:[%s1837_s1 + $0x58] sm:$0xff] (!%p238_p2) }
   0xa   : > { %1358 = vmatprep.subr.bf16.mxu0 (!%p238_p2), %v1357_v7  ;;  %1348 = vmatpush3.bf16.msra.mxu1 (!%p238_p2), %v1345_v8  ;;  %v1401_v20 = vpack.c.bf16 (!%p238_p2), %v1046_v16, %v1045_v15  ;;  %v1047_v23 = vld [vmem:[%s1839_s3 + $0x90] sm:$0xff] (!%p238_p2)  ;;  %v1048_v24 = vld [vmem:[%s1839_s3 + $0x98] sm:$0xff] (!%p238_p2)  ;;  %v572_v25 = vld [vmem:[%s1839_s3] sm:$0xff] (!%p238_p2)  ;;  %v1365_v28 = vpack.c.bf16 (!%p238_p2), %v1041_v22, %v1040_v21 }
   0xb   : > { %1350 = vmatprep.subr.bf16.mxu1 (!%p238_p2), %v1349_v14  ;;  %v573_v32 = vld [vmem:[%s1839_s3 + $0x8] sm:$0xff] (!%p238_p2)  ;;  %v1405_v33 = vpack.c.bf16 (!%p238_p2), %v1048_v24, %v1047_v23  ;;  %v1049_v34 = vld [vmem:[%s1839_s3 + $0xa0] sm:$0xff] (!%p238_p2)  ;;  %v574_v37 = vld [vmem:[%s1839_s3 + $0x10] sm:$0xff] (!%p238_p2) }
   0xc   : > { %v1050_v35 = vld [vmem:[%s1839_s3 + $0xa8] sm:$0xff] (!%p238_p2)  ;;  %v1369_v36 = vpack.c.bf16 (!%p238_p2), %v573_v32, %v572_v25  ;;  %v575_v38 = vld [vmem:[%s1839_s3 + $0x18] sm:$0xff] (!%p238_p2)  ;;  %v1051_v40 = vld [vmem:[%s1839_s3 + $0xb0] sm:$0xff] (!%p238_p2) }
   0xd   : > { %s1845_s25 = smov (!%p269_p3, %s1020_s25), 1  ;;  %1360 = vmatpush3.bf16.msra.mxu0 %v1357_v7  ;;  %v1409_v39 = vpack.c.bf16 %v1050_v35, %v1049_v34  ;;  %v1052_v41 = vld [vmem:[%s1839_s3 + $0xb8] sm:$0xff]  ;;  %v1373_v43 = vpack.c.bf16 %v575_v38, %v574_v37  ;;  %v576_v44 = vld [vmem:[%s1839_s3 + $0x20] sm:$0xff]  ;;  %v577_v45 = vld [vmem:[%s1839_s3 + $0x28] sm:$0xff] }
   0xe   : > { %s1080_s23 = sshll.u32 %s1845_s25, 4  ;;  %1362 = vmatprep.subr.bf16.mxu0 %v1361_v17  ;;  %1352 = vmatpush3.bf16.msra.mxu1 %v1349_v14  ;;  %v1413_v46 = vpack.c.bf16 %v1052_v41, %v1051_v40  ;;  %v1377_v47 = vpack.c.bf16 %v577_v45, %v576_v44  ;;  %v578_v48 = vld [vmem:[%s1839_s3 + $0x30] sm:$0xff]  ;;  %v579_v49 = vld [vmem:[%s1839_s3 + $0x38] sm:$0xff]  ;;  %v1053_v51 = vld [vmem:[%s1839_s3 + $0xc0] sm:$0xff] }
   0xf   : > { %s273_s9 = scalar_lea.vmem %s1836_s0, %s1080_s23  ;;  %1402 = vmatprep.subr.bf16.mxu1 %v1401_v20  ;;  %v1381_v50 = vpack.c.bf16 %v579_v49, %v578_v48  ;;  %v1054_v52 = vld [vmem:[%s1839_s3 + $0xc8] sm:$0xff]  ;;  %v1055_v54 = vld [vmem:[%s1839_s3 + $0xd0] sm:$0xff]  ;;  %v1056_v55 = vld [vmem:[%s1839_s3 + $0xd8] sm:$0xff]  ;;  %s278_s29 = scalar_lea.vmem %s1843_s7, %s1080_s23 }
  0x10   : > { %v282_v18 = vld [vmem:[%s273_s9] sm:$0xff]  ;;  %v283_v19 = vld [vmem:[%s273_s9 + $0x8] sm:$0xff]  ;;  %v1417_v53 = vpack.c.bf16 %v1054_v52, %v1053_v51  ;;  %v1421_v56 = vpack.c.bf16 %v1056_v55, %v1055_v54  ;;  %v1059_v63 = vld [vmem:[%s1839_s3 + $0xf0] sm:$0xff] }
  0x11   : > { %285 = vst.msk [vmem:[#allocation2 + $0x1] sm:$0xff] %vm284_vm1, %v282_v18  ;;  %286 = vst.msk [vmem:[#allocation2 + $0x9] sm:$0xff] %vm284_vm1, %v283_v19  ;;  %v580_v57 = vld [vmem:[%s1839_s3 + $0x40] sm:$0xff]  ;;  %v581_v58 = vld [vmem:[%s1839_s3 + $0x48] sm:$0xff] }
  0x12   : > { %v1385_v59 = vpack.c.bf16 %v581_v58, %v580_v57  ;;  %v1057_v60 = vld [vmem:[%s1839_s3 + $0xe0] sm:$0xff]  ;;  %v1058_v61 = vld [vmem:[%s1839_s3 + $0xe8] sm:$0xff]  ;;  %v1060_v0 = vld [vmem:[%s1839_s3 + $0xf8] sm:$0xff] }
  0x13   : > { %v1425_v62 = vpack.c.bf16 %v1058_v61, %v1057_v60  ;;  %v582_v1 = vld [vmem:[%s1839_s3 + $0x50] sm:$0xff]  ;;  %v583_v2 = vld [vmem:[%s1839_s3 + $0x58] sm:$0xff]  ;;  %v1429_v3 = vpack.c.bf16 %v1060_v0, %v1059_v63  ;;  %v1061_v5 = vld [vmem:[%s1839_s3 + $0x100] sm:$0xff] }
  0x14   : > { %v1389_v4 = vpack.c.bf16 %v583_v2, %v582_v1  ;;  %v1062_v6 = vld [vmem:[%s1839_s3 + $0x108] sm:$0xff]  ;;  %v584_v7 = vld [vmem:[%s1839_s3 + $0x60] sm:$0xff]  ;;  %v586_v11 = vld [vmem:[%s1839_s3 + $0x70] sm:$0xff] }
  0x15   : > { %v585_v8 = vld [vmem:[%s1839_s3 + $0x68] sm:$0xff]  ;;  %v1433_v9 = vpack.c.bf16 %v1062_v6, %v1061_v5  ;;  %v587_v12 = vld [vmem:[%s1839_s3 + $0x78] sm:$0xff]  ;;  %v1031_v16 = vld [vmem:[%s1838_s2] ss:$0 sm:$0xff] }
  0x16   : > { %v1393_v10 = vpack.c.bf16 %v585_v8, %v584_v7  ;;  %v1397_v13 = vpack.c.bf16 %v587_v12, %v586_v11  ;;  %v1063_v23 = vld [vmem:[%s1839_s3 + $0x110] sm:$0xff]  ;;  %v1064_v24 = vld [vmem:[%s1839_s3 + $0x118] sm:$0xff]  ;;  %v1069_v37 = vld [vmem:[%s1839_s3 + $0x140] sm:$0xff] }
  0x17   : > { %v1068_v32 = vld [vmem:[%s1839_s3 + $0x138] sm:$0xff]  ;;  %v1070_v38 = vld [vmem:[%s1839_s3 + $0x148] sm:$0xff]  ;;  %v1071_v40 = vld [vmem:[%s1839_s3 + $0x150] sm:$0xff] }
  0x18   : > { %v383_v26 = vld [vmem:[#allocation2 + $0x1] sm:$0xff]  ;;  %v384_v27 = vld [vmem:[#allocation2 + $0x9] sm:$0xff]  ;;  %v1072_v41 = vld [vmem:[%s1839_s3 + $0x158] sm:$0xff] }
  0x19   : > { %v288_v29 = vld [vmem:[#allocation2] sm:$0xff]  ;;  %1191 = vmatprep.mubr.msk.f32.mxu0 %vm284_vm1, %v383_v26  ;;  %v289_v30 = vld [vmem:[#allocation2 + $0x8] sm:$0xff]  ;;  %v868_v54 = vld [vmem:[%s1841_s5 + $0x18] sm:$0xff] }
  0x1a   : > { %1180 = vmatprep.mubr.msk.f32.mxu1 %vm284_vm1, %v288_v29  ;;  %v473_v31 = vld [vmem:[#allocation2 + $0x2] sm:$0xff]  ;;  %1192 = vmatmul.mubr.msk.f32.vlgmr.msra.gmra.mrb[0].mxu0 %vm284_vm1, %v384_v27  ;;  %v474_v42 = vld [vmem:[#allocation2 + $0xa] sm:$0xff]  ;;  %v1437_v27 = vpack.c.bf16 %v1064_v24, %v1063_v23  ;;  %v872_v60 = vld [vmem:[%s1841_s5 + $0x38] sm:$0xff] }
  0x1b   : > { %1181 = vmatmul.mubr.msk.f32.vlgmr.msra.gmra.mrb[0].mxu1 %vm284_vm1, %v289_v30  ;;  %1364 = vmatpush3.bf16.msra.mxu0 %v1361_v17  ;;  %v1066_v29 = vld [vmem:[%s1839_s3 + $0x128] sm:$0xff]  ;;  %v871_v58 = vld [vmem:[%s1841_s5 + $0x30] sm:$0xff]  ;;  %v876_v2 = vld [vmem:[%s1841_s5 + $0x58] sm:$0xff] }
  0x1c   : > { %1202 = vmatprep.mubr.msk.f32.mxu0 %vm284_vm1, %v473_v31  ;;  %1366 = vmatprep.subr.bf16.mxu0 %v1365_v28  ;;  %v1067_v31 = vld [vmem:[%s1839_s3 + $0x130] sm:$0xff]  ;;  %v1074_v44 = vld [vmem:[%s1839_s3 + $0x168] sm:$0xff]  ;;  %v1477_v61 = vpack.c.bf16 %v872_v60, %v871_v58  ;;  %v880_v8 = vld [vmem:[%s1841_s5 + $0x78] sm:$0xff] }
  0x1d   : > { %1404 = vmatpush3.bf16.msra.mxu1 %v1401_v20  ;;  %v866_v51 = vld [vmem:[%s1841_s5 + $0x8] sm:$0xff]  ;;  %v875_v1 = vld [vmem:[%s1841_s5 + $0x50] sm:$0xff]  ;;  %v1044_v12 = vld [vmem:[%s1840_s4] ss:$0 sm:$0xff] }
  0x1e   : > { %1406 = vmatprep.subr.bf16.mxu1 %v1405_v33  ;;  %v870_v57 = vld [vmem:[%s1841_s5 + $0x28] sm:$0xff]  ;;  %v879_v7 = vld [vmem:[%s1841_s5 + $0x70] sm:$0xff] }
  0x1f   : > { %1368 = vmatpush3.bf16.msra.mxu0 %v1365_v28  ;;  %v1065_v28 = vld [vmem:[%s1839_s3 + $0x120] sm:$0xff]  ;;  %v874_v63 = vld [vmem:[%s1841_s5 + $0x48] sm:$0xff] }
  0x20   : > { %1370 = vmatprep.subr.bf16.mxu0 %v1369_v36  ;;  %v1441_v30 = vpack.c.bf16 %v1066_v29, %v1065_v28  ;;  %v878_v5 = vld [vmem:[%s1841_s5 + $0x68] sm:$0xff] }
  0x21   : > { %1408 = vmatpush3.bf16.msra.mxu1 %v1405_v33 }
  0x22   : > { %1410 = vmatprep.subr.bf16.mxu1 %v1409_v39  ;;  %1203 = vmatmul.mubr.msk.f32.vlgmr.msra.gmra.mrb[0].mxu0 %vm284_vm1, %v474_v42  ;;  %v1453_v42 = vpack.c.bf16 %v1072_v41, %v1071_v40 }
  0x23   : > { %1372 = vmatpush3.bf16.msra.mxu0 %v1369_v36  ;;  %v1445_v36 = vpack.c.bf16 %v1068_v32, %v1067_v31 }
  0x24   : > { %1374 = vmatprep.subr.bf16.mxu0 %v1373_v43 }
  0x25   : > { %1412 = vmatpush3.bf16.msra.mxu1 %v1409_v39  ;;  %v1449_v39 = vpack.c.bf16 %v1070_v38, %v1069_v37 }
  0x26   : > { %1414 = vmatprep.subr.bf16.mxu1 %v1413_v46 }
  0x27   : > { %1376 = vmatpush3.bf16.msra.mxu0 %v1373_v43  ;;  %v1073_v43 = vld [vmem:[%s1839_s3 + $0x160] sm:$0xff] }
  0x28   : > { %1378 = vmatprep.subr.bf16.mxu0 %v1377_v47  ;;  %v1457_v45 = vpack.c.bf16 %v1074_v44, %v1073_v43 }
  0x29   : > { %1416 = vmatpush3.bf16.msra.mxu1 %v1413_v46  ;;  %v1075_v46 = vld [vmem:[%s1839_s3 + $0x170] sm:$0xff] }
  0x2a   : > { %1418 = vmatprep.subr.bf16.mxu1 %v1417_v53 }
  0x2b   : > { %1380 = vmatpush3.bf16.msra.mxu0 %v1377_v47  ;;  %v1076_v47 = vld [vmem:[%s1839_s3 + $0x178] sm:$0xff] }
  0x2c   : > { %1382 = vmatprep.subr.bf16.mxu0 %v1381_v50  ;;  %v1461_v48 = vpack.c.bf16 %v1076_v47, %v1075_v46 }
  0x2d   : > { %1420 = vmatpush3.bf16.msra.mxu1 %v1417_v53  ;;  %v867_v53 = vld [vmem:[%s1841_s5 + $0x10] sm:$0xff] }
  0x2e   : > { %1422 = vmatprep.subr.bf16.mxu1 %v1421_v56  ;;  %v1469_v55 = vpack.c.bf16 %v868_v54, %v867_v53 }
  0x2f   : > { %1384 = vmatpush3.bf16.msra.mxu0 %v1381_v50  ;;  %v865_v50 = vld [vmem:[%s1841_s5] sm:$0xff] }
  0x30   : > { %1386 = vmatprep.subr.bf16.mxu0 %v1385_v59  ;;  %v1465_v52 = vpack.c.bf16 %v866_v51, %v865_v50 }
  0x31   : > { %1424 = vmatpush3.bf16.msra.mxu1 %v1421_v56  ;;  %v869_v56 = vld [vmem:[%s1841_s5 + $0x20] sm:$0xff] }
  0x32   : > { %1426 = vmatprep.subr.bf16.mxu1 %v1425_v62 }
  0x33   : > { %1388 = vmatpush3.bf16.msra.mxu0 %v1385_v59  ;;  %v1473_v59 = vpack.c.bf16 %v870_v57, %v869_v56 }
  0x34   : > { %1390 = vmatprep.subr.bf16.mxu0 %v1389_v4 }
  0x35   : > { %1428 = vmatpush3.bf16.msra.mxu1 %v1425_v62  ;;  %v873_v62 = vld [vmem:[%s1841_s5 + $0x40] sm:$0xff] }
  0x36   : > { %1430 = vmatprep.subr.bf16.mxu1 %v1429_v3  ;;  %v1481_v0 = vpack.c.bf16 %v874_v63, %v873_v62 }
  0x37   : > { %1392 = vmatpush3.bf16.msra.mxu0 %v1389_v4  ;;  %v877_v4 = vld [vmem:[%s1841_s5 + $0x60] sm:$0xff] }
  0x38   : > { %1394 = vmatprep.subr.bf16.mxu0 %v1393_v10  ;;  %v1489_v6 = vpack.c.bf16 %v878_v5, %v877_v4 }
  0x39   : > { %1432 = vmatpush3.bf16.msra.mxu1 %v1429_v3  ;;  %v1485_v3 = vpack.c.bf16 %v876_v2, %v875_v1 }
  0x3a   : > { %1434 = vmatprep.subr.bf16.mxu1 %v1433_v9 }
  0x3b   : > { %1396 = vmatpush3.bf16.msra.mxu0 %v1393_v10 }
  0x3c   : > { %1398 = vmatprep.subr.bf16.mxu0 %v1397_v13 }
  0x3f   : > { %1400 = vmatpush3.bf16.msra.mxu0 %v1397_v13 }
  0x40   : > { %1466 = vmatprep.subr.bf16.mxu0 %v1465_v52 }
  0xee   : > { %v1182_v14 = vpop.f32.mrb[0].mxu1 }
  0xef   : > { %v366_v15 = vpop.f32.mrb[1].mxu1  ;;  %v382_v17 = vadd.f32 %v1182_v14, %v1031_v16 }
  0xf0   : > { %v381_v18 = vadd.f32 %v1031_v16, %v366_v15 }
  0xf5   : > { %v1204_v19 = vpop.f32.mrb[0].mxu0 }
  0xf6   : > { %v1498_v20 = vadd.f32 %v1204_v19, %v382_v17  ;;  %v552_v21 = vpop.f32.mrb[1].mxu0 }
  0xf7   : > { %v1500_v22 = vadd.f32 %v552_v21, %v381_v18  ;;  %v1077_v21 = vld [vmem:[%s1842_s6] ss:$0 sm:$0xff] }
  0xf8   : > { %v564_v25 = vmax.f32 %v1498_v20, 0.0 }
  0xf9   : > { %v563_v26 = vmax.f32 %v1500_v22, 0.0 }
  0xfa   : > { %568 = vst [vmem:[#allocation3 + $0x9] sm:$0xff] %v564_v25 }
  0xfb   : > { %567 = vst [vmem:[#allocation3 + $0x1] sm:$0xff] %v563_v26  ;;  %1272 = vmatprep.mubr.f32.mxu1 %v563_v26 }
  0xfc   : > { %1273 = vmatmul.mubr.f32.vlgmr.msra.gmra.mrb[2].mxu1 %v564_v25 }
  0xfd   : > { %1436 = vmatpush3.bf16.msra.mxu1 %v1433_v9  ;;  %v1493_v9 = vpack.c.bf16 %v880_v8, %v879_v7 }
  0xfe   : > { %1438 = vmatprep.subr.bf16.mxu1 %v1437_v27 }
 0x101   : > { %1440 = vmatpush3.bf16.msra.mxu1 %v1437_v27  ;;  %v768_v49 = vld [vmem:[#allocation3 + $0xa] sm:$0xff] }
 0x102   : > { %v570_v33 = vld [vmem:[#allocation3] sm:$0xff]  ;;  %v571_v34 = vld [vmem:[#allocation3 + $0x8] sm:$0xff]  ;;  %1442 = vmatprep.subr.bf16.mxu1 %v1441_v30 }
 0x103   : > { %v767_v35 = vld [vmem:[#allocation3 + $0x2] sm:$0xff]  ;;  %1237 = vmatprep.mubr.f32.mxu0 %v570_v33 }
 0x104   : > { %1307 = vmatprep.mubr.f32.mxu1 %v767_v35  ;;  %1238 = vmatmul.mubr.f32.vlgmr.msra.gmra.mrb[2].mxu0 %v571_v34 }
 0x105   : > { %1444 = vmatpush3.bf16.msra.mxu1 %v1441_v30  ;;  %1468 = vmatpush3.bf16.msra.mxu0 %v1465_v52 }
 0x106   : > { %1446 = vmatprep.subr.bf16.mxu1 %v1445_v36  ;;  %1470 = vmatprep.subr.bf16.mxu0 %v1469_v55 }
 0x109   : > { %1448 = vmatpush3.bf16.msra.mxu1 %v1445_v36  ;;  %1472 = vmatpush3.bf16.msra.mxu0 %v1469_v55 }
 0x10a   : > { %1450 = vmatprep.subr.bf16.mxu1 %v1449_v39  ;;  %1474 = vmatprep.subr.bf16.mxu0 %v1473_v59 }
 0x10d   : > { %1452 = vmatpush3.bf16.msra.mxu1 %v1449_v39  ;;  %1476 = vmatpush3.bf16.msra.mxu0 %v1473_v59 }
 0x10e   : > { %1454 = vmatprep.subr.bf16.mxu1 %v1453_v42  ;;  %1478 = vmatprep.subr.bf16.mxu0 %v1477_v61 }
 0x111   : > { %1456 = vmatpush3.bf16.msra.mxu1 %v1453_v42  ;;  %1480 = vmatpush3.bf16.msra.mxu0 %v1477_v61 }
 0x112   : > { %1458 = vmatprep.subr.bf16.mxu1 %v1457_v45  ;;  %1482 = vmatprep.subr.bf16.mxu0 %v1481_v0 }
 0x115   : > { %1460 = vmatpush3.bf16.msra.mxu1 %v1457_v45  ;;  %1484 = vmatpush3.bf16.msra.mxu0 %v1481_v0 }
 0x116   : > { %1462 = vmatprep.subr.bf16.mxu1 %v1461_v48  ;;  %1486 = vmatprep.subr.bf16.mxu0 %v1485_v3 }
 0x119   : > { %1464 = vmatpush3.bf16.msra.mxu1 %v1461_v48  ;;  %1488 = vmatpush3.bf16.msra.mxu0 %v1485_v3 }
 0x11a   : > { %1490 = vmatprep.subr.bf16.mxu0 %v1489_v6 }
 0x11c   : > { %1308 = vmatmul.mubr.f32.vlgmr.msra.gmra.mrb[2].mxu1 %v768_v49 }
 0x11d   : > { %1492 = vmatpush3.bf16.msra.mxu0 %v1489_v6 }
 0x11e   : > { %1494 = vmatprep.subr.bf16.mxu0 %v1493_v9 }
 0x121   : > { %1496 = vmatpush3.bf16.msra.mxu0 %v1493_v9 }
 0x1d7   : > { %v1239_v10 = vpop.f32.mrb[2].mxu0 }
 0x1d8   : > { %v654_v11 = vpop.f32.mrb[3].mxu0  ;;  %v670_v13 = vadd.f32 %v1239_v10, %v1044_v12 }
 0x1d9   : > { %v669_v14 = vadd.f32 %v1044_v12, %v654_v11 }
 0x1ef   : > { %v1309_v15 = vpop.f32.mrb[2].mxu1 }
 0x1f0   : > { %v1502_v16 = vadd.f32 %v1309_v15, %v670_v13  ;;  %v852_v17 = vpop.f32.mrb[3].mxu1 }
 0x1f1   : > { %v1504_v18 = vadd.f32 %v852_v17, %v669_v14 }
 0x1f2   : > { %v864_v20 = vmax.f32 %v1502_v16, 0.0 }
 0x1f3   : > { %v863_v19 = vmax.f32 %v1504_v18, 0.0 }
 0x1f5   : > { %1342 = vmatprep.mubr.f32.mxu0 %v863_v19 }
 0x1f6   : > { %1343 = vmatmul.mubr.f32.vlgmr.msra.gmra.mrb[4].mxu0 %v864_v20 }
 0x2c9   : > { %v1344_v22 = vpop.f32.mrb[4].mxu0 }
 0x2ca   : > { %v960_v23 = vadd.f32 %v1344_v22, %v1077_v21  ;;  %v954_v24 = vpop.f32.mrb[5].mxu0 }
 0x2cb   : > { %v955_v25 = vadd.f32 %v1077_v21, %v954_v24 }
 0x2cc   : > { %964 = vst [vmem:[%s278_s29 + $0x8] sm:$0xff] %v960_v23 }
 0x2cd   : > { %963 = vst [vmem:[%s278_s29] sm:$0xff] %v955_v25 }
 0x2ce PF: > { %s17_s24 = sadd.s32 1, %s1524_s24  }
 0x2cf   : > { %p14_p4 = scmp.ge.s32.totalorder %s17_s24, 4  }
 0x2d1   :  { %16 = sbr.rel (!%p14_p4) target bundleno = 1 (0x1), region = 82 }

</bundles_post_ra>
